<compile_context>
chip_gen: v5e
topology: v5e:2x2
jax: 0.10.0
libtpu: 0.0.40
codegen_flags: <defaults>
</compile_context>

<pallas_src>
import functools

import jax
import jax.numpy as jnp
import numpy as np
from jax.experimental import pallas as pl
from jax.experimental.pallas import tpu as pltpu


def _planar_kernel(zk_ref, u_ref, w_ref, b_ref, z_ref, ldj_ref, *, lane_dense):
    zk = zk_ref[...].astype(jnp.float32)                    # (tb, Z)
    u = u_ref[...].astype(jnp.float32)                      # (tb, Z)
    w = w_ref[...].astype(jnp.float32)                      # (tb, Z)
    b = b_ref[...].astype(jnp.float32)                      # (tb, 1)

    if lane_dense:
        # v7x: put the batch on the 128-lane axis so the elementwise body runs on fully
        # populated vregs; the XLU transposes ride in a slot with slack in this HBM-bound kernel.
        zk = jnp.transpose(zk)                              # (Z, tb)
        u = jnp.transpose(u)
        w = jnp.transpose(w)
        b = jnp.transpose(b)                                # (1, tb)
        red_axis = 0
    else:
        red_axis = 1

    # Per-batch scalars: Z-contractions on the VPU/XLU (keepdims row/column broadcasts back).
    uw = jnp.sum(w * u, axis=red_axis, keepdims=True)
    m_uw = jax.nn.softplus(uw) - 1.0
    w_norm_sq = jnp.sum(w * w, axis=red_axis, keepdims=True)

    # Hoisted per-batch coefficient (one divide per row instead of per element).  Guarded so
    # garbage lanes of a partial tail block (and degenerate w == 0) cannot emit NaN/Inf work;
    # real rows with w != 0 match the PyTorch reference exactly.
    valid = w_norm_sq > 0.0
    coeff = jnp.where(valid, (m_uw - uw) / jnp.where(valid, w_norm_sq, 1.0), 0.0)
    u_hat = u + coeff * w

    wzb = jnp.sum(w * zk, axis=red_axis, keepdims=True) + b
    h = jnp.tanh(wzb)

    z_new = zk + u_hat * h

    # log|det J| = log|1 + psi^T u_hat| with psi = w * tanh'(wzb).
    # Identity: w . u_hat = uw + coeff * ||w||^2 = m_uw, hence psi^T u_hat = tanh'(wzb) * m_uw.
    der_h = 1.0 - h * h
    ldj = jnp.log(jnp.abs(1.0 + der_h * m_uw))

    if lane_dense:
        z_new = jnp.transpose(z_new)                        # back to (tb, Z)
        ldj = jnp.transpose(ldj)                            # back to (tb, 1)

    z_ref[...] = z_new.astype(z_ref.dtype)
    ldj_ref[...] = ldj.astype(ldj_ref.dtype)


def _round_up(x, m):
    return ((x + m - 1) // m) * m


def _device_kind():
    try:
        return jax.devices()[0].device_kind.lower()
    except Exception:
        return ""


def _pick_batch_tile(B, Z, num_cores):
    # Exact double-buffered live-VMEM per grid step:
    #   2 buffers * [(3 inputs + 1 output) * Z + (b + ldj)] * tb * 4 bytes.
    bytes_per_batch_row = 2 * (4 * Z + 2) * 4
    budget = 8 << 20  # ~8 MiB live is already at ~85% of HBM roofline; ample headroom everywhere.
    tb = max(8, (budget // bytes_per_batch_row) // 8 * 8)
    if num_cores > 1:
        # Dual-TensorCore parts (v7x): keep >= 2 steps per core (>= 4 total) when B allows so each
        # core still overlaps DMA with compute under ("parallel",) sharding.
        per_core_pair = _round_up(pl.cdiv(B, 2 * num_cores), 8)
        tb = min(tb, max(128, per_core_pair))
    if tb >= B:
        return B  # single full-extent block (exempt from the 8-row alignment rule)
    return tb


def planar_flow(zk, u, w, b, *, batch_tile=None, lane_dense=None, vmem_limit_bytes=32 << 20):
    """zk (B, Z), u (B, Z, 1), w (B, 1, Z), b (B, 1, 1) -> (z' (B, Z), log_det (B,))."""
    B, Z = zk.shape
    assert u.shape == (B, Z, 1) and w.shape == (B, 1, Z) and b.shape == (B, 1, 1)

    # Free metadata reshapes of contiguous buffers - no HBM relayout passes.
    u2 = u.reshape(B, Z)
    w2 = w.reshape(B, Z)
    b2 = b.reshape(B, 1)

    kind = _device_kind()
    is_dual_core = ("v7" in kind) or ("tpu7" in kind)
    if lane_dense is None:
        lane_dense = is_dual_core  # only v7x is at risk of being VALU-bound at 25% lane fill
    num_cores = 2 if is_dual_core else 1

    tb = _pick_batch_tile(B, Z, num_cores) if batch_tile is None else batch_tile
    assert tb == B or tb % 8 == 0, "batch_tile must be a multiple of 8 (or equal to the batch)"

    grid = (pl.cdiv(B, tb),)
    mat_spec = pl.BlockSpec((tb, Z), lambda i: (i, 0))
    col_spec = pl.BlockSpec((tb, 1), lambda i: (i, 0))

    itemsize = jnp.dtype(zk.dtype).itemsize
    cost = pl.CostEstimate(
        flops=int(10 * B * Z),
        transcendentals=int(4 * B),
        bytes_accessed=int((3 * Z + 1) * B * itemsize + Z * B * itemsize + B * 4),
    )

    z_out, ldj = pl.pallas_call(
        functools.partial(_planar_kernel, lane_dense=lane_dense),
        out_shape=(
            jax.ShapeDtypeStruct((B, Z), zk.dtype),
            jax.ShapeDtypeStruct((B, 1), jnp.float32),
        ),
        grid=grid,
        in_specs=[mat_spec, mat_spec, mat_spec, col_spec],
        out_specs=(mat_spec, col_spec),
        compiler_params=pltpu.CompilerParams(
            dimension_semantics=("parallel",),
            vmem_limit_bytes=vmem_limit_bytes,
        ),
        cost_estimate=cost,
    )(zk, u2, w2, b2)

    return z_out, ldj[:, 0]


def _planar_reference(zk, u, w, b):
    """Pure-JAX reference mirroring the PyTorch module."""
    zk3 = zk[:, :, None]                                          # (B, Z, 1)
    uw = jnp.matmul(w, u)                                         # (B, 1, 1)
    m_uw = -1.0 + jax.nn.softplus(uw)
    w_norm_sq = jnp.sum(w ** 2, axis=2, keepdims=True)            # (B, 1, 1)
    u_hat = u + (m_uw - uw) * jnp.transpose(w, (0, 2, 1)) / w_norm_sq
    wzb = jnp.matmul(w, zk3) + b                                  # (B, 1, 1)
    z = zk3 + u_hat * jnp.tanh(wzb)
    z = z[:, :, 0]
    psi = w * (1.0 - jnp.tanh(wzb) ** 2)                          # (B, 1, Z)
    ldj = jnp.log(jnp.abs(1.0 + jnp.matmul(psi, u_hat)))          # (B, 1, 1)
    return z, ldj[:, 0, 0]


if __name__ == "__main__":
    # Small shapes consistent with the module (amortized flow params, z_size = 32).
    Z = 32
    key = jax.random.PRNGKey(0)
    k_z, k_u, k_w, k_b = jax.random.split(key, 4)

    B = 64
    # Moderate-scale amortized flow parameters (as an encoder would emit) keep ||w||^2 and the
    # log-det argument well-conditioned.
    zk = jax.random.normal(k_z, (B, Z), dtype=jnp.float32)
    u = 0.5 * jax.random.normal(k_u, (B, Z, 1), dtype=jnp.float32)
    w = 0.25 * jax.random.normal(k_w, (B, 1, Z), dtype=jnp.float32)
    b = 0.5 * jax.random.normal(k_b, (B, 1, 1), dtype=jnp.float32)

    z_out, ldj = planar_flow(zk, u, w, b)
    jax.block_until_ready((z_out, ldj))
    z_ref, ldj_ref = _planar_reference(zk, u, w, b)
    np.testing.assert_allclose(np.asarray(z_out), np.asarray(z_ref), rtol=1e-5, atol=1e-5)
    np.testing.assert_allclose(np.asarray(ldj), np.asarray(ldj_ref), rtol=1e-5, atol=1e-5)

    # Batch not a multiple of 8 -> single full-extent block (no padding anywhere).
    B2 = 13
    z2, ldj2 = planar_flow(zk[:B2], u[:B2], w[:B2], b[:B2])
    jax.block_until_ready((z2, ldj2))
    z2_ref, ldj2_ref = _planar_reference(zk[:B2], u[:B2], w[:B2], b[:B2])
    np.testing.assert_allclose(np.asarray(z2), np.asarray(z2_ref), rtol=1e-5, atol=1e-5)
    np.testing.assert_allclose(np.asarray(ldj2), np.asarray(ldj2_ref), rtol=1e-5, atol=1e-5)

    # Forced small tile: multi-step grid with a partial (masked-write) tail block, no padding.
    B3 = 52
    z3, ldj3 = planar_flow(zk[:B3], u[:B3], w[:B3], b[:B3], batch_tile=24)
    jax.block_until_ready((z3, ldj3))
    z3_ref, ldj3_ref = _planar_reference(zk[:B3], u[:B3], w[:B3], b[:B3])
    np.testing.assert_allclose(np.asarray(z3), np.asarray(z3_ref), rtol=1e-5, atol=1e-5)
    np.testing.assert_allclose(np.asarray(ldj3), np.asarray(ldj3_ref), rtol=1e-5, atol=1e-5)

    print("KERNEL_OK")
</pallas_src>

<mosaic_0001>
module attributes {stable_mosaic.version = 11 : i64} {
  func.func @_planar_kernel(%arg0: i32, %arg1: memref<64x32xf32, #tpu.memory_space<vmem>>, %arg2: memref<64x32xf32, #tpu.memory_space<vmem>>, %arg3: memref<64x32xf32, #tpu.memory_space<vmem>>, %arg4: memref<64x1xf32, #tpu.memory_space<vmem>>, %arg5: memref<64x32xf32, #tpu.memory_space<vmem>>, %arg6: memref<64x1xf32, #tpu.memory_space<vmem>>) attributes {dimension_semantics = [#tpu.dimension_semantics<parallel>], iteration_bounds = array<i64: 1>, scalar_prefetch = 0 : i64, scratch_operands = 0 : i64, tpu.core_type = #tpu.core_type<tc>, window_params = [{transform_indices = @transform_0, window_bounds = array<i64: 64, 32>}, {transform_indices = @transform_1, window_bounds = array<i64: 64, 32>}, {transform_indices = @transform_2, window_bounds = array<i64: 64, 32>}, {transform_indices = @transform_3, window_bounds = array<i64: 64, 1>}, {transform_indices = @transform_4, window_bounds = array<i64: 64, 32>}, {transform_indices = @transform_5, window_bounds = array<i64: 64, 1>}]} {
    %c0 = arith.constant 0 : index
    %c0_0 = arith.constant 0 : index
    %0 = vector.load %arg1[%c0, %c0_0] : memref<64x32xf32, #tpu.memory_space<vmem>>, vector<64x32xf32>
    %c0_1 = arith.constant 0 : index
    %c0_2 = arith.constant 0 : index
    %1 = vector.load %arg2[%c0_1, %c0_2] : memref<64x32xf32, #tpu.memory_space<vmem>>, vector<64x32xf32>
    %c0_3 = arith.constant 0 : index
    %c0_4 = arith.constant 0 : index
    %2 = vector.load %arg3[%c0_3, %c0_4] : memref<64x32xf32, #tpu.memory_space<vmem>>, vector<64x32xf32>
    %c0_5 = arith.constant 0 : index
    %c0_6 = arith.constant 0 : index
    %3 = vector.load %arg4[%c0_5, %c0_6] : memref<64x1xf32, #tpu.memory_space<vmem>>, vector<64x1xf32>
    %4 = arith.mulf %2, %1 : vector<64x32xf32>
    %cst = arith.constant dense<0.000000e+00> : vector<64xf32>
    %5 = vector.multi_reduction <add>, %4, %cst [1] : vector<64x32xf32> to vector<64xf32>
    %6 = vector.shape_cast %5 : vector<64xf32> to vector<64x1xf32>
    %cst_7 = arith.constant 0.000000e+00 : f32
    %7 = vector.broadcast %cst_7 : f32 to vector<64x1xf32>
    %8 = arith.maximumf %6, %7 : vector<64x1xf32>
    %9 = vector.broadcast %cst_7 : f32 to vector<64x1xf32>
    %10 = arith.subf %6, %9 : vector<64x1xf32>
    %11 = arith.cmpf one, %10, %10 : vector<64x1xf32>
    %12 = vector.broadcast %cst_7 : f32 to vector<64x1xf32>
    %13 = arith.addf %6, %12 : vector<64x1xf32>
    %14 = math.absf %10 : vector<64x1xf32>
    %cst_8 = arith.constant 0.000000e+00 : f32
    %15 = vector.broadcast %cst_8 : f32 to vector<64x1xf32>
    %16 = arith.subf %15, %14 : vector<64x1xf32>
    %17 = math.exp %16 : vector<64x1xf32>
    %18 = math.log1p %17 : vector<64x1xf32>
    %19 = arith.addf %8, %18 : vector<64x1xf32>
    %20 = arith.select %11, %13, %19 : vector<64x1xi1>, vector<64x1xf32>
    %cst_9 = arith.constant 1.000000e+00 : f32
    %21 = vector.broadcast %cst_9 : f32 to vector<64x1xf32>
    %22 = arith.subf %20, %21 : vector<64x1xf32>
    %23 = arith.mulf %2, %2 : vector<64x32xf32>
    %cst_10 = arith.constant dense<0.000000e+00> : vector<64xf32>
    %24 = vector.multi_reduction <add>, %23, %cst_10 [1] : vector<64x32xf32> to vector<64xf32>
    %25 = vector.shape_cast %24 : vector<64xf32> to vector<64x1xf32>
    %cst_11 = arith.constant 0.000000e+00 : f32
    %26 = vector.broadcast %cst_11 : f32 to vector<64x1xf32>
    %27 = arith.cmpf ogt, %25, %26 : vector<64x1xf32>
    %28 = arith.subf %22, %6 : vector<64x1xf32>
    %cst_12 = arith.constant 1.000000e+00 : f32
    %29 = vector.broadcast %cst_12 : f32 to vector<64x1xf32>
    %30 = arith.select %27, %25, %29 : vector<64x1xi1>, vector<64x1xf32>
    %31 = arith.divf %28, %30 : vector<64x1xf32>
    %cst_13 = arith.constant 0.000000e+00 : f32
    %32 = vector.broadcast %cst_13 : f32 to vector<64x1xf32>
    %33 = arith.select %27, %31, %32 : vector<64x1xi1>, vector<64x1xf32>
    %34 = vector.broadcast %33 : vector<64x1xf32> to vector<64x32xf32>
    %35 = arith.mulf %34, %2 : vector<64x32xf32>
    %36 = arith.addf %1, %35 : vector<64x32xf32>
    %37 = arith.mulf %2, %0 : vector<64x32xf32>
    %cst_14 = arith.constant dense<0.000000e+00> : vector<64xf32>
    %38 = vector.multi_reduction <add>, %37, %cst_14 [1] : vector<64x32xf32> to vector<64xf32>
    %39 = vector.shape_cast %38 : vector<64xf32> to vector<64x1xf32>
    %40 = arith.addf %39, %3 : vector<64x1xf32>
    %41 = math.tanh %40 : vector<64x1xf32>
    %42 = vector.broadcast %41 : vector<64x1xf32> to vector<64x32xf32>
    %43 = arith.mulf %36, %42 : vector<64x32xf32>
    %44 = arith.addf %0, %43 : vector<64x32xf32>
    %45 = arith.mulf %41, %41 : vector<64x1xf32>
    %cst_15 = arith.constant 1.000000e+00 : f32
    %46 = vector.broadcast %cst_15 : f32 to vector<64x1xf32>
    %47 = arith.subf %46, %45 : vector<64x1xf32>
    %48 = arith.mulf %47, %22 : vector<64x1xf32>
    %cst_16 = arith.constant 1.000000e+00 : f32
    %49 = vector.broadcast %cst_16 : f32 to vector<64x1xf32>
    %50 = arith.addf %49, %48 : vector<64x1xf32>
    %51 = math.absf %50 : vector<64x1xf32>
    %52 = math.log %51 : vector<64x1xf32>
    %c0_17 = arith.constant 0 : index
    %c0_18 = arith.constant 0 : index
    %53 = vector.load %arg5[%c0_17, %c0_18] : memref<64x32xf32, #tpu.memory_space<vmem>>, vector<64x32xf32>
    tpu.vector_store %arg5[%c0_17, %c0_18], %44 {strides = array<i32>} : memref<64x32xf32, #tpu.memory_space<vmem>>, vector<64x32xf32>,
    %c0_19 = arith.constant 0 : index
    %c0_20 = arith.constant 0 : index
    %54 = vector.load %arg6[%c0_19, %c0_20] : memref<64x1xf32, #tpu.memory_space<vmem>>, vector<64x1xf32>
    tpu.vector_store %arg6[%c0_19, %c0_20], %52 {strides = array<i32>} : memref<64x1xf32, #tpu.memory_space<vmem>>, vector<64x1xf32>,
    return
  }
  func.func @transform_0(%arg0: i32) -> (i32, i32) {
    %c0_i32 = arith.constant 0 : i32
    %c0_i32_0 = arith.constant 0 : i32
    return %arg0, %c0_i32 : i32, i32
  }
  func.func @transform_1(%arg0: i32) -> (i32, i32) {
    %c0_i32 = arith.constant 0 : i32
    %c0_i32_0 = arith.constant 0 : i32
    return %arg0, %c0_i32 : i32, i32
  }
  func.func @transform_2(%arg0: i32) -> (i32, i32) {
    %c0_i32 = arith.constant 0 : i32
    %c0_i32_0 = arith.constant 0 : i32
    return %arg0, %c0_i32 : i32, i32
  }
  func.func @transform_3(%arg0: i32) -> (i32, i32) {
    %c0_i32 = arith.constant 0 : i32
    %c0_i32_0 = arith.constant 0 : i32
    return %arg0, %c0_i32 : i32, i32
  }
  func.func @transform_4(%arg0: i32) -> (i32, i32) {
    %c0_i32 = arith.constant 0 : i32
    %c0_i32_0 = arith.constant 0 : i32
    return %arg0, %c0_i32 : i32, i32
  }
  func.func @transform_5(%arg0: i32) -> (i32, i32) {
    %c0_i32 = arith.constant 0 : i32
    %c0_i32_0 = arith.constant 0 : i32
    return %arg0, %c0_i32 : i32, i32
  }
}

</mosaic_0001>

<bundles_post_ra>
// kernel: tpu_custom_call.1
= control target key start
LH: loop header
LB: loop body
LE: loop exit
PB: predicated region body
PF: predicated region fallthrough
CT: control target
= control target key end

     0   :  { %vm59_vm0 = vcmask 261120   ;;  %s1431_s1 = inlined_call_operand.vmem [shape: f32[64,32], index: 1, kind: input, shape index: {}]   ;;  %s1432_s2 = inlined_call_operand.vmem [shape: f32[64,32], index: 2, kind: input, shape index: {}]   ;;  %s1433_s0 = inlined_call_operand.vmem [shape: f32[64,32], index: 0, kind: input, shape index: {}]   ;;  %s1434_s3 = inlined_call_operand.vmem [shape: f32[64,1], index: 3, kind: input, shape index: {}]   ;;  %s1435_s5 = inlined_call_operand.vmem [shape: f32[64,1], index: 5, kind: output, shape index: {1}]   ;;  %s1436_s4 = inlined_call_operand.vmem [shape: f32[64,32], index: 4, kind: output, shape index: {0}]  }
   0x1   :  { %v31_v0 = vld [vmem:[%s1431_s1 + $0x20] sm:$0xff]  ;;  %v773_v2 = vld [vmem:[%s1431_s1 + $0x10] sm:$0xff]  ;;  %v32_v9 = vld [vmem:[%s1431_s1 + $0x28] sm:$0xff] }
   0x2   :  { %v768_v1 = vld [vmem:[%s1432_s2 + $0x20] sm:$0xff]  ;;  %v779_v4 = vld [vmem:[%s1432_s2 + $0x10] sm:$0xff]  ;;  %v795_v10 = vld [vmem:[%s1432_s2 + $0x28] sm:$0xff] }
   0x3   :  { %v55_v3 = vmul.f32 %v768_v1, %v31_v0  ;;  %v27_v5 = vld [vmem:[%s1431_s1] sm:$0xff]  ;;  %v53_v7 = vmul.f32 %v779_v4, %v773_v2  ;;  %v30_v11 = vld [vmem:[%s1431_s1 + $0x18] sm:$0xff]  ;;  %v28_v14 = vld [vmem:[%s1431_s1 + $0x8] sm:$0xff]  ;;  %v56_v18 = vmul.f32 %v795_v10, %v32_v9  ;;  %v238_v35 = vmul.f32 %v779_v4, %v779_v4 }
   0x4   :  { %v35_v6 = vld [vmem:[%s1432_s2] sm:$0xff]  ;;  %v804_v13 = vld [vmem:[%s1432_s2 + $0x18] sm:$0xff]  ;;  %v36_v15 = vld [vmem:[%s1432_s2 + $0x8] sm:$0xff]  ;;  %v240_v60 = vmul.f32 %v768_v1, %v768_v1 }
   0x5   :  { %v51_v8 = vmul.f32 %v35_v6, %v27_v5  ;;  %v72_v12 = vsel %vm59_vm0, %v55_v3, 0.0  ;;  %v66_v16 = vsel %vm59_vm0, %v53_v7, 0.0  ;;  %v54_v19 = vmul.f32 %v804_v13, %v30_v11  ;;  %v34_v24 = vld [vmem:[%s1431_s1 + $0x38] sm:$0xff]  ;;  %v33_v26 = vld [vmem:[%s1431_s1 + $0x30] sm:$0xff]  ;;  %v20_v41 = vld [vmem:[%s1433_s0 + $0x8] sm:$0xff] }
   0x6   :  { %73 = vadd.xlane.f32.xlu2 %v72_v12  ;;  %67 = vadd.xlane.f32.xlu1 %v66_v16  ;;  %v52_v20 = vmul.f32 %v36_v15, %v28_v14  ;;  %v75_v21 = vsel %vm59_vm0, %v56_v18, 0.0  ;;  %v42_v25 = vld [vmem:[%s1432_s2 + $0x38] sm:$0xff]  ;;  %v41_v27 = vld [vmem:[%s1432_s2 + $0x30] sm:$0xff]  ;;  %v236_v28 = vmul.f32 %v35_v6, %v35_v6  ;;  %v239_v34 = vmul.f32 %v804_v13, %v804_v13  ;;  %v19_v42 = vld [vmem:[%s1433_s0] sm:$0xff] }
   0x7   :  { %v60_v17 = vsel %vm59_vm0, %v51_v8, 0.0  ;;  %v69_v22 = vsel %vm59_vm0, %v54_v19, 0.0  ;;  %v58_v29 = vmul.f32 %v42_v25, %v34_v24  ;;  %v57_v30 = vmul.f32 %v41_v27, %v33_v26  ;;  %v844_v40 = vld [vmem:[%s1433_s0 + $0x10] sm:$0xff]  ;;  %v860_v49 = vld [vmem:[%s1433_s0 + $0x28] sm:$0xff]  ;;  %v23_v50 = vld [vmem:[%s1433_s0 + $0x20] sm:$0xff] }
   0x8   :  { %61 = vadd.xlane.f32.xlu0 %v60_v17  ;;  %v63_v23 = vsel %vm59_vm0, %v52_v20, 0.0  ;;  %v244_v31 = vsel %vm59_vm0, %v236_v28, 0.0  ;;  %v237_v36 = vmul.f32 %v36_v15, %v36_v15  ;;  %v253_v37 = vsel %vm59_vm0, %v239_v34, 0.0  ;;  %v868_v51 = vld [vmem:[%s1433_s0 + $0x18] sm:$0xff]  ;;  %v25_v59 = vld [vmem:[%s1433_s0 + $0x30] sm:$0xff] }
   0x9   :  { %v81_v32 = vsel %vm59_vm0, %v58_v29, 0.0  ;;  %v78_v33 = vsel %vm59_vm0, %v57_v30, 0.0  ;;  %v250_v38 = vsel %vm59_vm0, %v238_v35, 0.0  ;;  %v438_v43 = vmul.f32 %v779_v4, %v844_v40  ;;  %v26_v58 = vld [vmem:[%s1433_s0 + $0x38] sm:$0xff] }
   0xa   :  { %v247_v39 = vsel %vm59_vm0, %v237_v36, 0.0  ;;  %v437_v44 = vmul.f32 %v36_v15, %v20_v41  ;;  %v436_v45 = vmul.f32 %v35_v6, %v19_v42  ;;  %v441_v52 = vmul.f32 %v795_v10, %v860_v49 }
   0xb   :  { %v450_v46 = vsel %vm59_vm0, %v438_v43, 0.0  ;;  %v440_v53 = vmul.f32 %v768_v1, %v23_v50  ;;  %v439_v54 = vmul.f32 %v804_v13, %v868_v51  ;;  %v443_v61 = vmul.f32 %v42_v25, %v26_v58 }
   0xc   :  { %v447_v47 = vsel %vm59_vm0, %v437_v44, 0.0  ;;  %v444_v48 = vsel %vm59_vm0, %v436_v45, 0.0  ;;  %v459_v55 = vsel %vm59_vm0, %v441_v52, 0.0  ;;  %v442_v62 = vmul.f32 %v41_v27, %v25_v59 }
   0xd   :  { %v456_v56 = vsel %vm59_vm0, %v440_v53, 0.0  ;;  %v453_v57 = vsel %vm59_vm0, %v439_v54, 0.0  ;;  %v256_v63 = vsel %vm59_vm0, %v240_v60, 0.0  ;;  %v465_v0 = vsel %vm59_vm0, %v443_v61, 0.0 }
   0xe   :  { %76 = vadd.xlane.f32.xlu2 %v75_v21  ;;  %70 = vadd.xlane.f32.xlu1 %v69_v22  ;;  %v462_v3 = vsel %vm59_vm0, %v442_v62, 0.0  ;;  %v243_v5 = vmul.f32 %v42_v25, %v42_v25  ;;  %v242_v6 = vmul.f32 %v41_v27, %v41_v27  ;;  %v241_v7 = vmul.f32 %v795_v10, %v795_v10 }
  0x10   :  { %64 = vadd.xlane.f32.xlu0 %v63_v23  ;;  %v265_v8 = vsel %vm59_vm0, %v243_v5, 0.0  ;;  %v262_v1 = vsel %vm59_vm0, %v242_v6, 0.0  ;;  %v259_v9 = vsel %vm59_vm0, %v241_v7, 0.0 }
  0x16   :  { %245 = vadd.xlane.f32.xlu2 %v244_v31  ;;  %82 = vadd.xlane.f32.xlu1 %v81_v32 }
  0x18   :  { %79 = vadd.xlane.f32.xlu0 %v78_v33 }
  0x1e   :  { %254 = vadd.xlane.f32.xlu2 %v253_v37  ;;  %251 = vadd.xlane.f32.xlu1 %v250_v38 }
  0x20   :  { %248 = vadd.xlane.f32.xlu0 %v247_v39 }
  0x26   :  { %451 = vadd.xlane.f32.xlu2 %v450_v46  ;;  %448 = vadd.xlane.f32.xlu1 %v447_v47 }
  0x28   :  { %445 = vadd.xlane.f32.xlu0 %v444_v48 }
  0x2e   :  { %460 = vadd.xlane.f32.xlu2 %v459_v55  ;;  %457 = vadd.xlane.f32.xlu1 %v456_v56 }
  0x30   :  { %454 = vadd.xlane.f32.xlu0 %v453_v57 }
  0x36   :  { %257 = vadd.xlane.f32.xlu2 %v256_v63  ;;  %466 = vadd.xlane.f32.xlu1 %v465_v0 }
  0x38   :  { %463 = vadd.xlane.f32.xlu0 %v462_v3 }
  0x3e   :  { %266 = vadd.xlane.f32.xlu2 %v265_v8  ;;  %263 = vadd.xlane.f32.xlu1 %v262_v1 }
  0x40   :  { %260 = vadd.xlane.f32.xlu0 %v259_v9 }
  0x79   :  { %v894_v11 = vpop.xlane.xlu2 %73  ;;  %v897_v14 = vpop.xlane.xlu1 %67 }
  0x7a   :  { %v112_v12 = vand.u32 2147483647, %v894_v11  ;;  %v110_v16 = vand.u32 2147483647, %v897_v14  ;;  %v88_v44 = vmax.f32 %v894_v11, 0.0  ;;  %v86_v52 = vmax.f32 %v897_v14, 0.0 }
  0x7b   :  { %v899_v15 = vpop.xlane.xlu0 %61  ;;  %vm94_vm3 = vcmp.ne.f32.partialorder %v897_v14, %v897_v14  ;;  %vm96_vm15 = vcmp.ne.f32.partialorder %v894_v11, %v894_v11 }
  0x7c   :  { %v120_v10 = vsub.f32 0.0, %v112_v12  ;;  %v108_v17 = vand.u32 2147483647, %v899_v15  ;;  %v118_v18 = vsub.f32 0.0, %v110_v16  ;;  %v84_v54 = vmax.f32 %v899_v15, 0.0 }
  0x7d   :  { %vm92_vm2 = vcmp.ne.f32.partialorder %v899_v15, %v899_v15 }
  0x7e   :  { %v116_v19 = vsub.f32 0.0, %v108_v17  ;;  %v128_v20 = vmul.f32 1.442695, %v118_v18  ;;  %v132_v21 = vmul.f32 1.442695, %v120_v10 }
  0x80   :  { %v124_v22 = vmul.f32 1.442695, %v116_v19  ;;  %633 = vpow2.f32 %v128_v20 }
  0x81   :  { %v903_v23 = vpop.xlane.xlu2 %76  ;;  %v905_v24 = vpop.xlane.xlu1 %70 }
  0x82   :  { %635 = vpow2.f32 %v124_v22  ;;  %v111_v26 = vand.u32 2147483647, %v905_v24  ;;  %v113_v33 = vand.u32 2147483647, %v903_v23  ;;  %v89_v57 = vmax.f32 %v903_v23, 0.0 }
  0x83   :  { %v907_v25 = vpop.xlane.xlu0 %64  ;;  %637 = vpow2.f32 %v132_v21  ;;  %v87_v59 = vmax.f32 %v905_v24, 0.0  ;;  %vm95_vm7 = vcmp.ne.f32.partialorder %v905_v24, %v905_v24 }
  0x84   :  { %v109_v27 = vand.u32 2147483647, %v907_v25  ;;  %v119_v28 = vsub.f32 0.0, %v111_v26  ;;  %v121_v43 = vsub.f32 0.0, %v113_v33  ;;  %v85_v16 = vmax.f32 %v907_v25, 0.0 }
  0x86   :  { %v634_v29 = vpop.eup %633  ;;  %v117_v30 = vsub.f32 0.0, %v109_v27  ;;  %v130_v34 = vmul.f32 1.442695, %v119_v28  ;;  %v134_v58 = vmul.f32 1.442695, %v121_v43 }
  0x87   :  { %v158_v32 = vadd.f32 1.0, %v634_v29  ;;  %v161_v38 = vmul.f32 -0.5, %v634_v29  ;;  %v164_v53 = vand.u32 2147483647, %v634_v29 }
  0x88   :  { %v636_v31 = vpop.eup %635  ;;  %v126_v41 = vmul.f32 1.442695, %v117_v30 }
  0x89   :  { %v140_v35 = vadd.f32 1.0, %v636_v31  ;;  %v912_v36 = vpop.xlane.xlu2 %245  ;;  %v638_v37 = vpop.eup %637  ;;  %639 = vlog2.f32 %v158_v32  ;;  %v143_v39 = vmul.f32 -0.5, %v636_v31  ;;  %v162_v48 = vadd.f32 1.0, %v161_v38 }
  0x8a   :  { %v914_v42 = vpop.xlane.xlu1 %82  ;;  %vm268_vm1 = vcmp.gt.f32.partialorder %v912_v36, 0.0  ;;  %v176_v45 = vadd.f32 1.0, %v638_v37  ;;  %v179_v47 = vmul.f32 -0.5, %v638_v37  ;;  %v146_v55 = vand.u32 2147483647, %v636_v31 }
  0x8b   :  { %641 = vlog2.f32 %v140_v35  ;;  %v921_v46 = vsel %vm268_vm1, %v912_v36, 1.0  ;;  %v144_v50 = vadd.f32 1.0, %v143_v39  ;;  %v182_v61 = vand.u32 2147483647, %v638_v37  ;;  %v933_v8 = vpop.xlane.xlu0 %79 }
  0x8c   :  { %643 = vpow2.f32 %v130_v34  ;;  %v115_v63 = vand.u32 2147483647, %v914_v42  ;;  %v180_v3 = vadd.f32 1.0, %v179_v47  ;;  %v163_v5 = vmul.f32 %v634_v29, %v162_v48 }
  0x8d   :  { %645 = vpow2.f32 %v126_v41  ;;  %v145_v7 = vmul.f32 %v636_v31, %v144_v50  ;;  %vm935_vm4 = vcmp.lt.f32.partialorder %v164_v53, 0.0004427343  ;;  %vm147_vm5 = vcmp.lt.f32.partialorder %v146_v55, 0.0004427343 }
  0x8e   :  { %647 = vrcp.f32 %v921_v46  ;;  %vm944_vm6 = vcmp.lt.f32.partialorder %v182_v61, 0.0004427343  ;;  %v123_v26 = vsub.f32 0.0, %v115_v63  ;;  %v950_v28 = vmul.f32 %v638_v37, %v180_v3 }
  0x8f   :  { %v640_v56 = vpop.eup %639  ;;  %649 = vlog2.f32 %v176_v45  ;;  %v301_v30 = vand.u32 2147483647, %v921_v46  ;;  %v303_v31 = vand.u32 2147483648, %v921_v46  ;;  %vm297_vm8 = vweird.f32 %v921_v46 }
  0x90   :  { %v160_v62 = vmul.f32 0.6931472, %v640_v56  ;;  %651 = vpow2.f32 %v134_v58  ;;  %v138_v45 = vmul.f32 1.442695, %v123_v26  ;;  %v114_v63 = vand.u32 2147483647, %v933_v8 }
  0x91   :  { %v642_v60 = vpop.eup %641  ;;  %v966_v47 = vpop.xlane.xlu2 %254  ;;  %vm972_vm10 = vcmp.eq.f32.partialorder %v301_v30, 8.507059e+37 }
  0x92   :  { %v644_v0 = vpop.eup %643  ;;  %v142_v6 = vmul.f32 0.6931472, %v642_v60  ;;  %v166_v17 = vsel %vm935_vm4, %v163_v5, %v160_v62  ;;  %v948_v27 = vpop.xlane.xlu1 %251  ;;  %vm271_vm12 = vcmp.gt.f32.partialorder %v966_v47, 0.0 }
  0x93   :  { %v646_v1 = vpop.eup %645  ;;  %v167_v12 = vadd.f32 1.0, %v644_v0  ;;  %v170_v19 = vmul.f32 -0.5, %v644_v0  ;;  %v214_v33 = vadd.f32 %v166_v17, %v86_v52  ;;  %v173_v38 = vand.u32 2147483647, %v644_v0  ;;  %v991_v3 = vpop.xlane.xlu0 %248 }
  0x94   :  { %v940_v10 = vpop.eup %647  ;;  %v148_v18 = vsel %vm147_vm5, %v145_v7, %v142_v6  ;;  %v149_v22 = vadd.f32 1.0, %v646_v1  ;;  %v152_v29 = vmul.f32 -0.5, %v646_v1  ;;  %v155_v58 = vand.u32 2147483647, %v646_v1 }
  0x95   :  { %v212_v21 = vadd.f32 %v148_v18, %v84_v54  ;;  %653 = vlog2.f32 %v167_v12  ;;  %v650_v32 = vpop.eup %649  ;;  %v293_v35 = vmul.f32 %v940_v10, %v921_v46  ;;  %v171_v37 = vadd.f32 1.0, %v170_v19 }
  0x96   :  { %655 = vlog2.f32 %v149_v22  ;;  %v153_v41 = vadd.f32 1.0, %v152_v29  ;;  %vm298_vm9 = vweird.f32 %v940_v10  ;;  %v968_v48 = vpop.eup %651  ;;  %v178_v50 = vmul.f32 0.6931472, %v650_v32 }
  0x97   :  { %v220_v34 = vsel %vm92_vm2, %v899_v15, %v212_v21  ;;  %v294_v43 = vsub.f32 1.0, %v293_v35  ;;  %v304_v54 = vor.u32 1.1754944e-38, %v303_v31  ;;  %v222_v56 = vsel %vm94_vm3, %v897_v14, %v214_v33  ;;  %vm985_vm11 = vmor %vm297_vm8, %vm298_vm9 }
  0x98   :  { %v962_v39 = vadd.f32 -1.0, %v220_v34  ;;  %657 = vpow2.f32 %v138_v45  ;;  %v172_v62 = vmul.f32 %v644_v0, %v171_v37  ;;  %vm174_vm13 = vcmp.lt.f32.partialorder %v173_v38, 0.0004427343 }
  0x99   :  { %v295_v60 = vmul.f32 %v940_v10, %v294_v43  ;;  %v154_v6 = vmul.f32 %v646_v1, %v153_v41  ;;  %v997_v0 = vsel %vm271_vm12, %v966_v47, 1.0  ;;  %v122_v12 = vsub.f32 0.0, %v114_v63 }
  0x9a   :  { %v276_v52 = vsub.f32 %v962_v39, %v899_v15  ;;  %659 = vrcp.f32 %v997_v0  ;;  %v188_v17 = vmul.f32 -0.5, %v968_v48  ;;  %vm156_vm14 = vcmp.lt.f32.partialorder %v155_v58, 0.0004427343  ;;  %v1006_v19 = vpop.xlane.xlu1 %448 }
  0x9b   :  { %v654_v55 = vpop.eup %653  ;;  %v296_v7 = vadd.f32 %v940_v10, %v295_v60  ;;  %v184_v21 = vsel %vm944_vm6, %v950_v28, %v178_v50  ;;  %v136_v29 = vmul.f32 1.442695, %v122_v12  ;;  %v1021_v20 = vadd.f32 -1.0, %v222_v56  ;;  %v446_v53 = vpop.xlane.xlu0 %445 }
  0x9c   :  { %v169_v61 = vmul.f32 0.6931472, %v654_v55  ;;  %v656_v5 = vpop.eup %655  ;;  %v185_v28 = vadd.f32 1.0, %v968_v48  ;;  %vm93_vm2 = vcmp.ne.f32.partialorder %v907_v25, %v907_v25  ;;  %vm270_vm3 = vcmp.gt.f32.partialorder %v948_v27, 0.0 }
  0x9d   :  { %v151_v9 = vmul.f32 0.6931472, %v656_v5  ;;  %v300_v1 = vsel %vm985_vm11, %v940_v10, %v296_v7  ;;  %661 = vpow2.f32 %v136_v29  ;;  %v216_v37 = vadd.f32 %v184_v21, %v88_v44  ;;  %v45_v5 = vld [vmem:[%s1434_s3 + $0x10] sm:$0xff] }
  0x9e   :  { %v175_v46 = vsel %vm174_vm13, %v172_v62, %v169_v61  ;;  %v305_v26 = vsel %vm972_vm10, %v304_v54, %v300_v1  ;;  %v658_v30 = vpop.eup %657  ;;  %v189_v38 = vadd.f32 1.0, %v188_v17  ;;  %vm342_vm4 = vweird.f32 %v997_v0  ;;  %v43_v1 = vld [vmem:[%s1434_s3] sm:$0xff] }
  0x9f   :  { %v215_v18 = vadd.f32 %v175_v46, %v87_v59  ;;  %v157_v22 = vsel %vm156_vm14, %v154_v6, %v151_v9  ;;  %v306_v31 = vmul.f32 %v305_v26, %v276_v52  ;;  %v203_v32 = vadd.f32 1.0, %v658_v30  ;;  %v452_v6 = vpop.xlane.xlu2 %451 }
  0xa0   :  { %v213_v10 = vadd.f32 %v157_v22, %v85_v16  ;;  %v660_v16 = vpop.eup %659  ;;  %v206_v41 = vmul.f32 -0.5, %v658_v30  ;;  %v278_v36 = vsub.f32 %v1021_v20, %v897_v14  ;;  %v346_v50 = vand.u32 2147483647, %v997_v0 }
  0xa1   :  { %v223_v59 = vsel %vm95_vm7, %v905_v24, %v215_v18  ;;  %v1029_v34 = vsel %vm268_vm1, %v306_v31, 0.0  ;;  %663 = vlog2.f32 %v203_v32  ;;  %v338_v45 = vmul.f32 %v660_v16, %v997_v0  ;;  %v44_v18 = vld [vmem:[%s1434_s3 + $0x8] sm:$0xff] }
  0xa2   :  { %v221_v33 = vsel %vm93_vm2, %v907_v25, %v213_v10  ;;  %v1031_v35 = vadd.f32 -1.0, %v223_v59  ;;  %v1046_v52 = vsel %vm270_vm3, %v948_v27, 1.0  ;;  %vm269_vm1 = vcmp.gt.f32.partialorder %v991_v3, 0.0  ;;  %v458_v7 = vpop.xlane.xlu1 %457 }
  0xa3   :  { %v1048_v44 = vadd.f32 -1.0, %v221_v33  ;;  %v339_v54 = vsub.f32 1.0, %v338_v45  ;;  %v348_v55 = vand.u32 2147483648, %v997_v0  ;;  %665 = vrcp.f32 %v1046_v52  ;;  %v1053_v56 = vpop.eup %661 }
  0xa4   :  { %v279_v43 = vsub.f32 %v1031_v35, %v905_v24  ;;  %v209_v24 = vand.u32 2147483647, %v658_v30  ;;  %v207_v58 = vadd.f32 1.0, %v206_v41  ;;  %vm343_vm5 = vweird.f32 %v660_v16 }
  0xa5   :  { %v277_v60 = vsub.f32 %v1048_v44, %v907_v25  ;;  %v1060_v61 = vsel %vm269_vm1, %v991_v3, 1.0  ;;  %667 = vlog2.f32 %v185_v28  ;;  %v191_v62 = vand.u32 2147483647, %v968_v48  ;;  %vm1089_vm7 = vmor %vm342_vm4, %vm343_vm5  ;;  %v49_v3 = vld [vmem:[%s1434_s3 + $0x30] sm:$0xff] }
  0xa6   :  { %v91_v15 = vmax.f32 %v914_v42, 0.0  ;;  %v340_v63 = vmul.f32 %v660_v16, %v339_v54  ;;  %v224_v9 = vsel %vm96_vm15, %v894_v11, %v216_v37  ;;  %v1072_v12 = vmul.f32 %v968_v48, %v189_v38 }
  0xa7   :  { %v664_v46 = vpop.eup %663  ;;  %v194_v17 = vadd.f32 1.0, %v1053_v56  ;;  %669 = vrcp.f32 %v1060_v61  ;;  %vm1082_vm6 = vcmp.lt.f32.partialorder %v209_v24, 0.0004427343  ;;  %vm1093_vm8 = vcmp.eq.f32.partialorder %v346_v50, 8.507059e+37 }
  0xa8   :  { %v349_v29 = vor.u32 1.1754944e-38, %v348_v55  ;;  %v331_v59 = vand.u32 2147483647, %v1046_v52  ;;  %v208_v10 = vmul.f32 %v658_v30, %v207_v58  ;;  %v341_v31 = vadd.f32 %v660_v16, %v340_v63  ;;  %v48_v55 = vld [vmem:[%s1434_s3 + $0x28] sm:$0xff] }
  0xa9   :  { %v333_v28 = vand.u32 2147483648, %v1046_v52  ;;  %v470_v32 = vadd.f32 %v452_v6, %v45_v5  ;;  %v666_v33 = vpop.eup %665  ;;  %v205_v37 = vmul.f32 0.6931472, %v664_v46  ;;  %vm327_vm9 = vweird.f32 %v1046_v52  ;;  %v46_v5 = vld [vmem:[%s1434_s3 + $0x18] sm:$0xff]  ;;  %v455_v6 = vpop.xlane.xlu0 %454 }
  0xaa   :  { %v469_v0 = vadd.f32 %v1006_v19, %v44_v18  ;;  %v468_v38 = vadd.f32 %v446_v53, %v43_v1  ;;  %671 = vlog2.f32 %v194_v17  ;;  %v197_v41 = vmul.f32 -0.5, %v1053_v56  ;;  %v47_v19 = vld [vmem:[%s1434_s3 + $0x20] sm:$0xff] }
  0xab   :  { %v345_v45 = vsel %vm1089_vm7, %v660_v16, %v341_v31  ;;  %v323_v50 = vmul.f32 %v666_v33, %v1046_v52  ;;  %v1105_v30 = vpop.eup %667  ;;  %v200_v24 = vand.u32 2147483647, %v1053_v56  ;;  %vm1110_vm10 = vcmp.eq.f32.partialorder %v331_v59, 8.507059e+37  ;;  %v50_v59 = vld [vmem:[%s1434_s3 + $0x38] sm:$0xff] }
  0xac   :  { %v350_v54 = vsel %vm1093_vm8, %v349_v29, %v345_v45  ;;  %673 = vtanh.f32 %v470_v32  ;;  %v334_v63 = vor.u32 1.1754944e-38, %v333_v28  ;;  %v211_v46 = vsel %vm1082_vm6, %v208_v10, %v205_v37  ;;  %v467_v10 = vpop.xlane.xlu1 %466 }
  0xad   :  { %v1117_v53 = vpop.eup %669  ;;  %v351_v16 = vmul.f32 %v350_v54, %v279_v43  ;;  %v324_v58 = vsub.f32 1.0, %v323_v50  ;;  %675 = vtanh.f32 %v469_v0  ;;  %vm312_vm11 = vweird.f32 %v1060_v61 }
  0xae   :  { %v308_v17 = vmul.f32 %v1117_v53, %v1060_v61  ;;  %677 = vtanh.f32 %v468_v38  ;;  %vm328_vm13 = vweird.f32 %v666_v33  ;;  %v472_v1 = vadd.f32 %v458_v7, %v47_v19 }
  0xaf   :  { %v1129_v43 = vsel %vm271_vm12, %v351_v16, 0.0  ;;  %v325_v18 = vmul.f32 %v666_v33, %v324_v58  ;;  %v316_v26 = vand.u32 2147483647, %v1060_v61  ;;  %v318_v29 = vand.u32 2147483648, %v1060_v61  ;;  %vm1140_vm12 = vmor %vm327_vm9, %vm328_vm13 }
  0xb0   :  { %v309_v22 = vsub.f32 1.0, %v308_v17  ;;  %v471_v21 = vadd.f32 %v455_v6, %v46_v5  ;;  %v672_v31 = vpop.eup %671  ;;  %v1136_v28 = vadd.f32 %v211_v46, %v91_v15  ;;  %679 = vtanh.f32 %v472_v1 }
  0xb1   :  { %v326_v47 = vadd.f32 %v666_v33, %v325_v18  ;;  %vm313_vm14 = vweird.f32 %v1117_v53  ;;  %v731_v0 = vmov 0   ;;  %v1146_v38 = vadd.f32 -1.0, %v224_v9 }
  0xb2   :  { %v674_v32 = vpop.eup %673  ;;  %v310_v37 = vmul.f32 %v1117_v53, %v309_v22  ;;  %681 = vtanh.f32 %v471_v21  ;;  %632 = vset.pattern.permute.xlu2 %v731_v0  ;;  %631 = vset.pattern.permute.xlu1 %v731_v0  ;;  %vm99_vm15 = vcmp.ne.f32.partialorder %v914_v42, %v914_v42  ;;  %v198_v45 = vadd.f32 1.0, %v197_v41  ;;  %vm314_vm4 = vmor %vm312_vm11, %vm313_vm14 }
  0xb3   :  { %v676_v15 = vpop.eup %675  ;;  %v330_v52 = vsel %vm1140_vm12, %v666_v33, %v326_v47  ;;  %v542_v50 = vmul.f32 %v674_v32, %v674_v32  ;;  %630 = vset.pattern.permute.xlu0 %v731_v0  ;;  %496 = vperm.xlu2 %632, %v674_v32   ;;  %v475_v54 = vadd.f32 %v467_v10, %v50_v59  ;;  %vm1154_vm2 = vcmp.lt.f32.partialorder %v191_v62, 0.0004427343 }
  0xb4   :  { %v678_v19 = vpop.eup %677  ;;  %v335_v9 = vsel %vm1110_vm10, %v334_v63, %v330_v52  ;;  %v311_v58 = vadd.f32 %v1117_v53, %v310_v37  ;;  %v319_v41 = vor.u32 1.1754944e-38, %v318_v29  ;;  %v541_v5 = vmul.f32 %v676_v15, %v676_v15  ;;  %491 = vperm.xlu1 %631, %v676_v15   ;;  %v461_v63 = vpop.xlane.xlu2 %460 }
  0xb5   :  { %v336_v33 = vmul.f32 %v335_v9, %v278_v36  ;;  %v550_v48 = vsub.f32 1.0, %v542_v50  ;;  %v540_v62 = vmul.f32 %v678_v19, %v678_v19  ;;  %486 = vperm.xlu0 %630, %v678_v19   ;;  %v280_v6 = vsub.f32 %v1146_v38, %v894_v11  ;;  %v464_v15 = vpop.xlane.xlu0 %463 }
  0xb6   :  { %v315_v46 = vsel %vm314_vm4, %v1117_v53, %v311_v58  ;;  %vm317_vm5 = vcmp.eq.f32.partialorder %v316_v26, 8.507059e+37  ;;  %v549_v14 = vsub.f32 1.0, %v541_v5  ;;  %683 = vtanh.f32 %v475_v54  ;;  %v680_v36 = vpop.eup %679 }
  0xb7   :  { %v1176_v61 = vsel %vm270_vm3, %v336_v33, 0.0  ;;  %v320_v17 = vsel %vm317_vm5, %v319_v41, %v315_v46  ;;  %v558_v18 = vmul.f32 %v1021_v20, %v550_v48  ;;  %v548_v1 = vsub.f32 1.0, %v540_v62 }
  0xb8   :  { %v682_v22 = vpop.eup %681  ;;  %v196_v29 = vmul.f32 0.6931472, %v672_v31  ;;  %v321_v21 = vmul.f32 %v320_v17, %v277_v60  ;;  %v557_v53 = vmul.f32 %v1048_v44, %v549_v14  ;;  %v473_v26 = vadd.f32 %v461_v63, %v48_v55 }
  0xb9   :  { %v566_v59 = vadd.f32 1.0, %v558_v18  ;;  %v556_v10 = vmul.f32 %v962_v39, %v548_v1  ;;  %v544_v47 = vmul.f32 %v680_v36, %v680_v36  ;;  %v543_v27 = vmul.f32 %v682_v22, %v682_v22 }
  0xba   :  { %v187_v32 = vmul.f32 0.6931472, %v1105_v30  ;;  %vm1187_vm3 = vcmp.lt.f32.partialorder %v200_v24, 0.0004427343  ;;  %v1193_v25 = vsel %vm269_vm1, %v321_v21, 0.0  ;;  %v565_v60 = vadd.f32 1.0, %v557_v53 }
  0xbb   :  { %v199_v44 = vmul.f32 %v1053_v56, %v198_v45  ;;  %v574_v31 = vand.u32 2147483647, %v566_v59  ;;  %v564_v7 = vadd.f32 1.0, %v556_v10  ;;  %v552_v39 = vsub.f32 1.0, %v544_v47  ;;  %501 = vperm.xlu2 %632, %v682_v22  }
  0xbc   :  { %v684_v37 = vpop.eup %683  ;;  %v227_v30 = vsel %vm99_vm15, %v914_v42, %v1136_v28  ;;  %v573_v24 = vand.u32 2147483647, %v565_v60  ;;  %685 = vtanh.f32 %v473_v26  ;;  %v551_v0 = vsub.f32 1.0, %v543_v27  ;;  %506 = vperm.xlu1 %631, %v680_v36  }
  0xbd   :  { %v202_v56 = vsel %vm1187_vm3, %v199_v44, %v196_v29  ;;  %687 = vlog2.f32 %v574_v31  ;;  %v572_v45 = vand.u32 2147483647, %v564_v7  ;;  %v560_v52 = vmul.f32 %v1146_v38, %v552_v39  ;;  %521 = vperm.xlu0 %630, %v684_v37  }
  0xbe   :  { %v90_v50 = vmax.f32 %v933_v8, 0.0  ;;  %689 = vlog2.f32 %v573_v24  ;;  %v559_v28 = vmul.f32 %v1031_v35, %v551_v0  ;;  %v547_v54 = vmul.f32 %v684_v37, %v684_v37 }
  0xbf   :  { %v193_v19 = vsel %vm1154_vm2, %v1072_v12, %v187_v32  ;;  %691 = vlog2.f32 %v572_v45  ;;  %v568_v9 = vadd.f32 1.0, %v560_v52  ;;  %v474_v58 = vadd.f32 %v464_v15, %v49_v3 }
  0xc0   :  { %v218_v41 = vadd.f32 %v202_v56, %v90_v50  ;;  %v567_v5 = vadd.f32 1.0, %v559_v28  ;;  %v555_v33 = vsub.f32 1.0, %v547_v54  ;;  %v1212_v48 = vadd.f32 -1.0, %v227_v30  ;;  %v261_v54 = vpop.xlane.xlu0 %260 }
  0xc1   :  { %v576_v62 = vand.u32 2147483647, %v568_v9  ;;  %693 = vtanh.f32 %v474_v58  ;;  %v217_v12 = vadd.f32 %v193_v19, %v89_v57  ;;  %vm98_vm1 = vcmp.ne.f32.partialorder %v933_v8, %v933_v8  ;;  %v1266_v9 = vpop.xlane.xlu2 %257 }
  0xc2   :  { %v686_v55 = vpop.eup %685  ;;  %v575_v63 = vand.u32 2147483647, %v567_v5  ;;  %v283_v35 = vsub.f32 %v1212_v48, %v914_v42  ;;  %v563_v46 = vmul.f32 %v1212_v48, %v555_v33  ;;  %vm604_vm6 = vcmask 7168   ;;  %v719_v48 = vld [vmem:[%s1431_s1] sm:$0xff] }
  0xc3   :  { %v688_v14 = vpop.eup %687  ;;  %695 = vlog2.f32 %v576_v62  ;;  %511 = vperm.xlu2 %632, %v686_v55   ;;  %v226_v36 = vsel %vm98_vm1, %v933_v8, %v218_v41  ;;  %v545_v29 = vmul.f32 %v686_v55, %v686_v55  ;;  %vm97_vm7 = vcmp.ne.f32.partialorder %v903_v23, %v903_v23 }
  0xc4   :  { %v690_v16 = vpop.eup %689  ;;  %v585_v17 = vmul.f32 0.6931472, %v688_v14  ;;  %697 = vlog2.f32 %v575_v63  ;;  %v571_v18 = vadd.f32 1.0, %v563_v46  ;;  %v1232_v26 = vadd.f32 -1.0, %v226_v36  ;;  %v1281_v46 = vpop.xlane.xlu1 %263 }
  0xc5   :  { %v692_v1 = vpop.eup %691  ;;  %v583_v22 = vmul.f32 0.6931472, %v690_v16  ;;  %v225_v59 = vsel %vm97_vm7, %v903_v23, %v217_v12  ;;  %v553_v27 = vsub.f32 1.0, %v545_v29  ;;  %vm273_vm8 = vcmp.gt.f32.partialorder %v261_v54, 0.0 }
  0xc6   :  { %607 = vst.msk [vmem:[%s1435_s5 + $0x10] sm:$0xff] %vm604_vm6, %v585_v17  ;;  %v581_v57 = vmul.f32 0.6931472, %v692_v1  ;;  %v579_v21 = vand.u32 2147483647, %v571_v18  ;;  %v282_v32 = vsub.f32 %v1232_v26, %v933_v8  ;;  %v1241_v7 = vadd.f32 -1.0, %v225_v59 }
  0xc7   :  { %v694_v53 = vpop.eup %693  ;;  %606 = vst.msk [vmem:[%s1435_s5 + $0x8] sm:$0xff] %vm604_vm6, %v583_v22  ;;  %v289_v19 = vsel %vm273_vm8, %v261_v54, 1.0  ;;  %vm272_vm9 = vcmp.gt.f32.partialorder %v1266_v9, 0.0  ;;  %v422_v36 = vmul.f32 %v1176_v61, %v779_v4  ;;  %vm274_vm14 = vcmp.gt.f32.partialorder %v1281_v46, 0.0  ;;  %v727_v8 = vld [vmem:[%s1433_s0 + $0x38] sm:$0xff] }
  0xc8   :  { %605 = vst.msk [vmem:[%s1435_s5] sm:$0xff] %vm604_vm6, %v581_v57  ;;  %v546_v10 = vmul.f32 %v694_v53, %v694_v53  ;;  %699 = vlog2.f32 %v579_v21  ;;  %516 = vperm.xlu1 %631, %v694_v53   ;;  %v561_v37 = vmul.f32 %v1241_v7, %v553_v27  ;;  %v288_v62 = vsel %vm272_vm9, %v1266_v9, 1.0  ;;  %v720_v9 = vld [vmem:[%s1432_s2 + $0x20] sm:$0xff] }
  0xc9   :  { %v696_v47 = vpop.eup %695  ;;  %v1268_v41 = vpop.xlane.xlu2 %266  ;;  %vm372_vm11 = vweird.f32 %v289_v19  ;;  %v378_v14 = vand.u32 2147483648, %v289_v19  ;;  %v376_v16 = vand.u32 2147483647, %v289_v19  ;;  %v1289_v57 = vsel %vm274_vm14, %v1281_v46, 1.0 }
  0xca   :  { %v698_v20 = vpop.eup %697  ;;  %v589_v60 = vmul.f32 0.6931472, %v696_v47  ;;  %v554_v44 = vsub.f32 1.0, %v546_v10  ;;  %v569_v3 = vadd.f32 1.0, %v561_v37  ;;  %vm275_vm10 = vcmp.gt.f32.partialorder %v1268_v41, 0.0 }
  0xcb   :  { %v587_v31 = vmul.f32 0.6931472, %v698_v20  ;;  %v1278_v55 = vsel %vm275_vm10, %v1268_v41, 1.0  ;;  %v379_v1 = vor.u32 1.1754944e-38, %v378_v14  ;;  %vm377_vm15 = vcmp.eq.f32.partialorder %v376_v16, 8.507059e+37 }
  0xcc   :  { %609 = vst.msk [vmem:[%s1435_s5 + $0x20] sm:$0xff] %vm604_vm6, %v589_v60  ;;  %v562_v39 = vmul.f32 %v1232_v26, %v554_v44  ;;  %v577_v56 = vand.u32 2147483647, %v569_v3  ;;  %v430_v21 = vadd.f32 %v422_v36, %v773_v2  ;;  %v281_v10 = vsub.f32 %v1241_v7, %v903_v23 }
  0xcd   :  { %608 = vst.msk [vmem:[%s1435_s5 + $0x18] sm:$0xff] %vm604_vm6, %v587_v31  ;;  %v423_v47 = vmul.f32 %v1129_v43, %v804_v13  ;;  %v713_v31 = vld [vmem:[%s1431_s1 + $0x18] sm:$0xff]  ;;  %vm357_vm2 = vweird.f32 %v288_v62  ;;  %vm402_vm5 = vweird.f32 %v1278_v55  ;;  %v391_v11 = vand.u32 2147483647, %v1289_v57 }
  0xce   :  { %v700_v30 = vpop.eup %699  ;;  %v570_v24 = vadd.f32 1.0, %v562_v39 }
  0xcf   :  { %v595_v0 = vmul.f32 0.6931472, %v700_v30  ;;  %v431_v39 = vadd.f32 %v713_v31, %v423_v47  ;;  %v363_v30 = vand.u32 2147483648, %v288_v62 }
  0xd0   :  { %v578_v15 = vand.u32 2147483647, %v570_v24  ;;  %v408_v24 = vand.u32 2147483648, %v1278_v55 }
  0xd1   :  { %612 = vst.msk [vmem:[%s1435_s5 + $0x38] sm:$0xff] %vm604_vm6, %v595_v0  ;;  %v364_v54 = vor.u32 1.1754944e-38, %v363_v30 }
  0xd2   :  { %701 = vlog2.f32 %v578_v15  ;;  %v714_v15 = vld [vmem:[%s1432_s2 + $0x28] sm:$0xff] }
  0xd3   :  { %703 = vlog2.f32 %v577_v56 }
  0xd4   :  { %705 = vrcp.f32 %v289_v19 }
  0xd5   :  { %707 = vrcp.f32 %v288_v62 }
  0xd6   :  { %709 = vrcp.f32 %v1278_v55 }
  0xd7   :  { %711 = vrcp.f32 %v1289_v57 }
  0xd8   :  { %v702_v45 = vpop.eup %701 }
  0xd9   :  { %v704_v52 = vpop.eup %703  ;;  %v593_v50 = vmul.f32 0.6931472, %v702_v45 }
  0xda   :  { %v591_v28 = vmul.f32 0.6931472, %v704_v52  ;;  %v706_v58 = vpop.eup %705 }
  0xdb   :  { %611 = vst.msk [vmem:[%s1435_s5 + $0x30] sm:$0xff] %vm604_vm6, %v593_v50  ;;  %v368_v5 = vmul.f32 %v706_v58, %v289_v19  ;;  %vm373_vm13 = vweird.f32 %v706_v58  ;;  %v708_v17 = vpop.eup %707 }
  0xdc   :  { %610 = vst.msk [vmem:[%s1435_s5 + $0x28] sm:$0xff] %vm604_vm6, %v591_v28  ;;  %vm374_vm12 = vmor %vm372_vm11, %vm373_vm13  ;;  %v710_v18 = vpop.eup %709  ;;  %v353_v29 = vmul.f32 %v708_v17, %v288_v62  ;;  %vm358_vm4 = vweird.f32 %v708_v17  ;;  %v406_v28 = vand.u32 2147483647, %v1278_v55  ;;  %vm387_vm11 = vweird.f32 %v1289_v57 }
  0xdd   :  { %v369_v33 = vsub.f32 1.0, %v368_v5  ;;  %v398_v53 = vmul.f32 %v710_v18, %v1278_v55  ;;  %v1306_v23 = vpop.eup %711  ;;  %vm403_vm3 = vweird.f32 %v710_v18  ;;  %vm1317_vm1 = vmor %vm357_vm2, %vm358_vm4  ;;  %v715_v5 = vld [vmem:[%s1431_s1 + $0x28] sm:$0xff] }
  0xde   :  { %v354_v27 = vsub.f32 1.0, %v353_v29  ;;  %v383_v3 = vmul.f32 %v1306_v23, %v1289_v57  ;;  %vm404_vm6 = vmor %vm402_vm5, %vm403_vm3  ;;  %vm388_vm13 = vweird.f32 %v1306_v23 }
  0xdf   :  { %v370_v63 = vmul.f32 %v706_v58, %v369_v33  ;;  %v399_v60 = vsub.f32 1.0, %v398_v53 }
  0xe0   :  { %v355_v2 = vmul.f32 %v708_v17, %v354_v27 }
  0xe1   :  { %v371_v12 = vadd.f32 %v706_v58, %v370_v63  ;;  %v400_v7 = vmul.f32 %v710_v18, %v399_v60  ;;  %v722_v60 = vld [vmem:[%s1432_s2 + $0x38] sm:$0xff] }
  0xe2   :  { %v356_v0 = vadd.f32 %v708_v17, %v355_v2  ;;  %v723_v2 = vld [vmem:[%s1433_s0] sm:$0xff] }
  0xe3   :  { %v375_v22 = vsel %vm374_vm12, %v706_v58, %v371_v12  ;;  %v401_v50 = vadd.f32 %v710_v18, %v400_v7  ;;  %v409_v58 = vor.u32 1.1754944e-38, %v408_v24  ;;  %vm1356_vm12 = vmor %vm387_vm11, %vm388_vm13 }
  0xe4   :  { %v380_v4 = vsel %vm377_vm15, %v379_v1, %v375_v22  ;;  %v360_v19 = vsel %vm1317_vm1, %v708_v17, %v356_v0  ;;  %v716_v17 = vld [vmem:[%s1432_s2 + $0x8] sm:$0xff]  ;;  %v717_v22 = vld [vmem:[%s1432_s2] sm:$0xff]  ;;  %vm392_vm15 = vcmp.eq.f32.partialorder %v391_v11, 8.507059e+37 }
  0xe5   :  { %v381_v44 = vmul.f32 %v380_v4, %v281_v10  ;;  %v421_v1 = vmul.f32 %v716_v17, %v1193_v25  ;;  %v393_v25 = vand.u32 2147483648, %v1289_v57 }
  0xe7   :  { %v417_v13 = vsel %vm273_vm8, %v381_v44, 0.0  ;;  %vm407_vm8 = vcmp.eq.f32.partialorder %v406_v28, 8.507059e+37 }
  0xe8   :  { %v425_v56 = vmul.f32 %v714_v15, %v417_v13 }
  0xea   :  { %v433_v33 = vadd.f32 %v715_v5, %v425_v56 }
 0x10d   :  { %v497_v59 = vpop.permute.xlu2 %496 }
 0x10e   :  { %v526_v61 = vmul.f32 %v497_v59, %v430_v21  ;;  %v394_v59 = vor.u32 1.1754944e-38, %v393_v25 }
 0x110   :  { %v534_v20 = vadd.f32 %v526_v61, %v844_v40  ;;  %v361_v40 = vand.u32 2147483647, %v288_v62  ;;  %v405_v62 = vsel %vm404_vm6, %v710_v18, %v401_v50  ;;  %v420_v18 = vmul.f32 %v717_v22, %v1029_v34 }
 0x111   :  { %v410_v12 = vsel %vm407_vm8, %v409_v58, %v405_v62 }
 0x112   :  { %598 = vst.msk [vmem:[%s1436_s4 + $0x10] sm:$0xff] %vm59_vm0, %v534_v20  ;;  %vm362_vm7 = vcmp.eq.f32.partialorder %v361_v40, 8.507059e+37  ;;  %v721_v20 = vld [vmem:[%s1433_s0 + $0x8] sm:$0xff]  ;;  %v725_v40 = vld [vmem:[%s1431_s1 + $0x38] sm:$0xff] }
 0x113   :  { %v365_v14 = vsel %vm362_vm7, %v364_v54, %v360_v19  ;;  %v730_v54 = vld [vmem:[%s1433_s0 + $0x30] sm:$0xff] }
 0x114   :  { %v366_v29 = vmul.f32 %v365_v14, %v280_v6  ;;  %v718_v6 = vld [vmem:[%s1431_s1 + $0x8] sm:$0xff] }
 0x115   :  { %v502_v43 = vpop.permute.xlu2 %501  ;;  %v429_v21 = vadd.f32 %v718_v6, %v421_v1 }
 0x116   :  { %v527_v37 = vmul.f32 %v502_v43, %v431_v39  ;;  %v416_v53 = vsel %vm272_vm9, %v366_v29, 0.0 }
 0x117   :  { %v424_v27 = vmul.f32 %v720_v9, %v416_v53 }
 0x118   :  { %v535_v45 = vadd.f32 %v527_v37, %v868_v51  ;;  %v384_v51 = vsub.f32 1.0, %v383_v3  ;;  %v726_v3 = vld [vmem:[%s1433_s0 + $0x20] sm:$0xff] }
 0x11a   :  { %599 = vst.msk [vmem:[%s1436_s4 + $0x18] sm:$0xff] %vm59_vm0, %v535_v45  ;;  %v385_v16 = vmul.f32 %v1306_v23, %v384_v51  ;;  %v729_v45 = vld [vmem:[%s1431_s1 + $0x30] sm:$0xff] }
 0x11c   :  { %v386_v34 = vadd.f32 %v1306_v23, %v385_v16 }
 0x11d   :  { %v512_v55 = vpop.permute.xlu2 %511 }
 0x11e   :  { %v529_v63 = vmul.f32 %v512_v55, %v433_v33  ;;  %v390_v10 = vsel %vm1356_vm12, %v1306_v23, %v386_v34  ;;  %v724_v23 = vld [vmem:[%s1431_s1 + $0x20] sm:$0xff] }
 0x11f   :  { %v395_v39 = vsel %vm392_vm15, %v394_v59, %v390_v10  ;;  %v432_v7 = vadd.f32 %v724_v23, %v424_v27 }
 0x120   :  { %v537_v36 = vadd.f32 %v529_v63, %v860_v49  ;;  %v411_v49 = vmul.f32 %v410_v12, %v283_v35  ;;  %v428_v35 = vadd.f32 %v719_v48, %v420_v18  ;;  %v396_v13 = vmul.f32 %v395_v39, %v282_v32  ;;  %v728_v32 = vld [vmem:[%s1432_s2 + $0x30] sm:$0xff] }
 0x122   :  { %601 = vst.msk [vmem:[%s1436_s4 + $0x28] sm:$0xff] %vm59_vm0, %v537_v36  ;;  %v419_v57 = vsel %vm275_vm10, %v411_v49, 0.0  ;;  %v418_v56 = vsel %vm274_vm14, %v396_v13, 0.0 }
 0x123   :  { %v427_v44 = vmul.f32 %v722_v60, %v419_v57  ;;  %v426_v46 = vmul.f32 %v728_v32, %v418_v56 }
 0x125   :  { %v435_v37 = vadd.f32 %v725_v40, %v427_v44  ;;  %v434_v52 = vadd.f32 %v729_v45, %v426_v46 }
 0x126   :  { %v492_v42 = vpop.permute.xlu1 %491 }
 0x127   :  { %v525_v4 = vmul.f32 %v492_v42, %v429_v21  ;;  %v487_v61 = vpop.permute.xlu0 %486 }
 0x128   :  { %v524_v47 = vmul.f32 %v487_v61, %v428_v35 }
 0x129   :  { %v533_v41 = vadd.f32 %v721_v20, %v525_v4 }
 0x12a   :  { %v532_v31 = vadd.f32 %v723_v2, %v524_v47 }
 0x12b   :  { %597 = vst.msk [vmem:[%s1436_s4 + $0x8] sm:$0xff] %vm59_vm0, %v533_v41 }
 0x12c   :  { %596 = vst.msk [vmem:[%s1436_s4] sm:$0xff] %vm59_vm0, %v532_v31 }
 0x12e   :  { %v507_v43 = vpop.permute.xlu1 %506 }
 0x12f   :  { %v528_v30 = vmul.f32 %v507_v43, %v432_v7  ;;  %v522_v24 = vpop.permute.xlu0 %521 }
 0x130   :  { %v531_v0 = vmul.f32 %v522_v24, %v435_v37 }
 0x131   :  { %v536_v15 = vadd.f32 %v726_v3, %v528_v30 }
 0x132   :  { %v539_v26 = vadd.f32 %v727_v8, %v531_v0 }
 0x133   :  { %600 = vst.msk [vmem:[%s1436_s4 + $0x20] sm:$0xff] %vm59_vm0, %v536_v15 }
 0x134   :  { %603 = vst.msk [vmem:[%s1436_s4 + $0x38] sm:$0xff] %vm59_vm0, %v539_v26 }
 0x13a   :  { %v517_v50 = vpop.permute.xlu1 %516 }
 0x13b   :  { %v530_v28 = vmul.f32 %v517_v50, %v434_v52 }
 0x13d   :  { %v538_v19 = vadd.f32 %v730_v54, %v530_v28 }
 0x13f   :  { %602 = vst.msk [vmem:[%s1436_s4 + $0x30] sm:$0xff] %vm59_vm0, %v538_v19 }

</bundles_post_ra>
